<compile_context>
chip_gen: v7x
topology: tpu7x:2x2x1
jax: 0.10.0
libtpu: 0.0.40
codegen_flags: <defaults>
</compile_context>

<pallas_src>
import jax
import jax.numpy as jnp
from jax.experimental import pallas as pl
from jax.experimental.pallas import tpu as pltpu

INPUT_SIZE = 8                 # Observation_High/Low have 8 entries
HIDDEN_SIZE = 32
OUTPUT_SIZE = INPUT_SIZE - 2   # forced by `model_out + x[..., :-2]`
LANE = 128                     # batch-tile granularity

# Largest batch tile.  Worst-case in-kernel VMEM per row (f32):
#   x block 32 B * 2 buffers + out block 24 B * 2 buffers
#   + h1/h2 intermediates 128 B each + y 24 B   ~= 400 B/row
# -> ~12.5 MiB at 32768 rows; fits every generation once the scoped limit is
#    raised to 32 MiB (v5e default 16 MiB; v6e/v7x default 32 MiB, v7x physical 64 MiB).
MAX_TILE_B = 32768
VMEM_LIMIT_BYTES = 32 * 1024 * 1024


def mlp_kernel(x_ref, w1_ref, b1_ref, w2_ref, b2_ref, w3_ref, b3_ref, o_ref):
    """(normalize folded into w1) -> Linear/ReLU x2 -> Linear/Tanh -> residual add.

    Native (batch, features) layout: x is (tile_b, 8), output is (tile_b, 6).
    Weights are pre-transposed to (in, out), so every dot is in natural MXU form.
    """
    x = x_ref[...]                                                       # (tile_b, 8) raw x
    # Layer 1 (+ folded 1/obs_range scaling) + ReLU
    h = jnp.dot(x, w1_ref[...], preferred_element_type=jnp.float32) + b1_ref[...]
    h = jnp.maximum(h, 0.0)                                              # (tile_b, HIDDEN)
    # Layer 2 + ReLU
    h = jnp.dot(h, w2_ref[...], preferred_element_type=jnp.float32) + b2_ref[...]
    h = jnp.maximum(h, 0.0)
    # Layer 3 + Tanh
    y = jnp.dot(h, w3_ref[...], preferred_element_type=jnp.float32) + b3_ref[...]
    y = jnp.tanh(y)                                                      # (tile_b, OUTPUT)
    # Residual uses the *raw* (un-normalized) input, matching the PyTorch module.
    o_ref[...] = y + x[:, :OUTPUT_SIZE]


def _round_up(n, m):
    return -(-n // m) * m


def _choose_tiling(batch):
    """Step-first tile sizing: choose the number of grid steps, then the tile."""
    b128 = _round_up(max(batch, 1), LANE)
    n_steps = pl.cdiv(b128, MAX_TILE_B)            # enough steps for the VMEM cap
    if b128 >= 2 * LANE:
        n_steps = max(n_steps, 2)                  # >=2 parallel steps -> both v7x TCs busy
    n_steps = min(n_steps, b128 // LANE)           # never below 128 rows per step
    tile_b = _round_up(pl.cdiv(b128, n_steps), LANE)
    return tile_b, n_steps, tile_b * n_steps


@jax.jit
def neural_network_model(x, kparams):
    """x: (B, INPUT_SIZE) float32 -> (B, OUTPUT_SIZE) float32."""
    w1t, b1, w2t, b2, w3t, b3 = kparams
    B = x.shape[0]
    tile_b, n_steps, B_pad = _choose_tiling(B)

    if B_pad != B:
        x = jnp.pad(x, ((0, B_pad - B), (0, 0)))   # bounded by <=127 rows per step

    const = lambda shape: pl.BlockSpec(shape, lambda i: (0, 0))

    out = pl.pallas_call(
        mlp_kernel,
        out_shape=jax.ShapeDtypeStruct((B_pad, OUTPUT_SIZE), jnp.float32),
        grid_spec=pltpu.PrefetchScalarGridSpec(
            num_scalar_prefetch=0,
            grid=(n_steps,),
            in_specs=[
                pl.BlockSpec((tile_b, INPUT_SIZE), lambda i: (i, 0)),    # x, native layout
                const((INPUT_SIZE, HIDDEN_SIZE)),                        # w1^T (pre-scaled by 1/range)
                const((1, HIDDEN_SIZE)),                                 # b1
                const((HIDDEN_SIZE, HIDDEN_SIZE)),                       # w2^T
                const((1, HIDDEN_SIZE)),                                 # b2
                const((HIDDEN_SIZE, OUTPUT_SIZE)),                       # w3^T
                const((1, OUTPUT_SIZE)),                                 # b3
            ],
            out_specs=pl.BlockSpec((tile_b, OUTPUT_SIZE), lambda i: (i, 0)),
        ),
        compiler_params=pltpu.CompilerParams(
            dimension_semantics=("parallel",),
            vmem_limit_bytes=VMEM_LIMIT_BYTES),
    )(x, w1t, b1, w2t, b2, w3t, b3)

    return out[:B] if B_pad != B else out


def init_params(key):
    """Deterministic synthetic parameters in PyTorch layout: W (out, in), b (out,)."""
    ks = jax.random.split(key, 6)

    def linear(kw, kb, fan_in, fan_out):
        bound = 1.0 / jnp.sqrt(fan_in)
        w = jax.random.uniform(kw, (fan_out, fan_in), jnp.float32, -bound, bound)
        b = jax.random.uniform(kb, (fan_out,), jnp.float32, -bound, bound)
        return w, b

    w1, b1 = linear(ks[0], ks[1], INPUT_SIZE, HIDDEN_SIZE)
    w2, b2 = linear(ks[2], ks[3], HIDDEN_SIZE, HIDDEN_SIZE)
    w3, b3 = linear(ks[4], ks[5], HIDDEN_SIZE, OUTPUT_SIZE)

    obs_high = jnp.array([1.5, 1.5, 5.0, 5.0, 3.14, 5.0, 1.0, 1.0], jnp.float32)
    obs_low = jnp.array([-1.5, -1.5, -5.0, -5.0, -3.14, -5.0, -1.0, -1.0], jnp.float32)
    obs_range = obs_high - obs_low

    return (w1, b1, w2, b2, w3, b3, obs_range)


def prepare_kernel_params(torch_params):
    """Fold normalization into w1, pre-transpose weights to (in, out), and
    reshape biases to (1, out) for the native (batch, features) layout."""
    w1, b1, w2, b2, w3, b3, obs_range = torch_params
    w1s = w1 * (1.0 / obs_range)[None, :]
    return (w1s.T, b1.reshape(1, -1),
            w2.T, b2.reshape(1, -1),
            w3.T, b3.reshape(1, -1))


def reference_forward(x, torch_params):
    """Pure-JAX reference mirroring the PyTorch module."""
    w1, b1, w2, b2, w3, b3, obs_range = torch_params
    xn = x / obs_range
    h = jnp.maximum(xn @ w1.T + b1, 0.0)
    h = jnp.maximum(h @ w2.T + b2, 0.0)
    y = jnp.tanh(h @ w3.T + b3)
    return y + x[..., :-2]


if __name__ == "__main__":
    key = jax.random.PRNGKey(0)
    kx, kp = jax.random.split(key)

    torch_params = init_params(kp)
    kparams = prepare_kernel_params(torch_params)

    # Small demo batch (pads to one 128-row tile) plus a ragged batch that
    # exercises the >=2-step "parallel" grid and the step-first padding policy.
    for B in (8, 300):
        x = jax.random.normal(jax.random.fold_in(kx, B), (B, INPUT_SIZE), jnp.float32)
        out = jax.block_until_ready(neural_network_model(x, kparams))
        ref = reference_forward(x, torch_params)
        assert out.shape == (B, OUTPUT_SIZE)
        assert jnp.allclose(out, ref, atol=1e-5, rtol=1e-5), f"mismatch vs reference (B={B})"

    print("KERNEL_OK")
</pallas_src>

<mosaic_0001>
module attributes {stable_mosaic.version = 11 : i64} {
  func.func @mlp_kernel(%arg0: i32, %arg1: memref<128x8xf32, #tpu.memory_space<vmem>>, %arg2: memref<8x32xf32, #tpu.memory_space<vmem>>, %arg3: memref<1x32xf32, #tpu.memory_space<vmem>>, %arg4: memref<32x32xf32, #tpu.memory_space<vmem>>, %arg5: memref<1x32xf32, #tpu.memory_space<vmem>>, %arg6: memref<32x6xf32, #tpu.memory_space<vmem>>, %arg7: memref<1x6xf32, #tpu.memory_space<vmem>>, %arg8: memref<128x6xf32, #tpu.memory_space<vmem>>) attributes {dimension_semantics = [#tpu.dimension_semantics<parallel>], iteration_bounds = array<i64: 1>, scalar_prefetch = 0 : i64, scratch_operands = 0 : i64, tpu.core_type = #tpu.core_type<tc>, window_params = [{transform_indices = @transform_0, window_bounds = array<i64: 128, 8>}, {pipeline_mode = #tpu.pipeline_mode<synchronous>, transform_indices = @transform_1, window_bounds = array<i64: 8, 32>}, {pipeline_mode = #tpu.pipeline_mode<synchronous>, transform_indices = @transform_2, window_bounds = array<i64: 1, 32>}, {pipeline_mode = #tpu.pipeline_mode<synchronous>, transform_indices = @transform_3, window_bounds = array<i64: 32, 32>}, {pipeline_mode = #tpu.pipeline_mode<synchronous>, transform_indices = @transform_4, window_bounds = array<i64: 1, 32>}, {pipeline_mode = #tpu.pipeline_mode<synchronous>, transform_indices = @transform_5, window_bounds = array<i64: 32, 6>}, {pipeline_mode = #tpu.pipeline_mode<synchronous>, transform_indices = @transform_6, window_bounds = array<i64: 1, 6>}, {transform_indices = @transform_7, window_bounds = array<i64: 128, 6>}]} {
    %c0 = arith.constant 0 : index
    %c0_0 = arith.constant 0 : index
    %0 = vector.load %arg1[%c0, %c0_0] : memref<128x8xf32, #tpu.memory_space<vmem>>, vector<128x8xf32>
    %c0_1 = arith.constant 0 : index
    %c0_2 = arith.constant 0 : index
    %1 = vector.load %arg2[%c0_1, %c0_2] : memref<8x32xf32, #tpu.memory_space<vmem>>, vector<8x32xf32>
    %cst = arith.constant dense<0.000000e+00> : vector<128x32xf32>
    %2 = tpu.matmul %0, %1, %cst {dimension_numbers = #tpu.dot_dimension_numbers<[1], [0], [0], [1], [0, 0, 1, 1], [], []>} : vector<128x8xf32>, vector<8x32xf32>, vector<128x32xf32> -> vector<128x32xf32>
    %c0_3 = arith.constant 0 : index
    %c0_4 = arith.constant 0 : index
    %3 = vector.load %arg3[%c0_3, %c0_4] : memref<1x32xf32, #tpu.memory_space<vmem>>, vector<1x32xf32>
    %4 = vector.broadcast %3 : vector<1x32xf32> to vector<128x32xf32>
    %5 = arith.addf %2, %4 : vector<128x32xf32>
    %cst_5 = arith.constant 0.000000e+00 : f32
    %6 = vector.broadcast %cst_5 : f32 to vector<128x32xf32>
    %7 = arith.maximumf %5, %6 : vector<128x32xf32>
    %c0_6 = arith.constant 0 : index
    %c0_7 = arith.constant 0 : index
    %8 = vector.load %arg4[%c0_6, %c0_7] : memref<32x32xf32, #tpu.memory_space<vmem>>, vector<32x32xf32>
    %cst_8 = arith.constant dense<0.000000e+00> : vector<128x32xf32>
    %9 = tpu.matmul %7, %8, %cst_8 {dimension_numbers = #tpu.dot_dimension_numbers<[1], [0], [0], [1], [0, 0, 1, 1], [], []>} : vector<128x32xf32>, vector<32x32xf32>, vector<128x32xf32> -> vector<128x32xf32>
    %c0_9 = arith.constant 0 : index
    %c0_10 = arith.constant 0 : index
    %10 = vector.load %arg5[%c0_9, %c0_10] : memref<1x32xf32, #tpu.memory_space<vmem>>, vector<1x32xf32>
    %11 = vector.broadcast %10 : vector<1x32xf32> to vector<128x32xf32>
    %12 = arith.addf %9, %11 : vector<128x32xf32>
    %cst_11 = arith.constant 0.000000e+00 : f32
    %13 = vector.broadcast %cst_11 : f32 to vector<128x32xf32>
    %14 = arith.maximumf %12, %13 : vector<128x32xf32>
    %c0_12 = arith.constant 0 : index
    %c0_13 = arith.constant 0 : index
    %15 = vector.load %arg6[%c0_12, %c0_13] : memref<32x6xf32, #tpu.memory_space<vmem>>, vector<32x6xf32>
    %cst_14 = arith.constant dense<0.000000e+00> : vector<128x6xf32>
    %16 = tpu.matmul %14, %15, %cst_14 {dimension_numbers = #tpu.dot_dimension_numbers<[1], [0], [0], [1], [0, 0, 1, 1], [], []>} : vector<128x32xf32>, vector<32x6xf32>, vector<128x6xf32> -> vector<128x6xf32>
    %c0_15 = arith.constant 0 : index
    %c0_16 = arith.constant 0 : index
    %17 = vector.load %arg7[%c0_15, %c0_16] : memref<1x6xf32, #tpu.memory_space<vmem>>, vector<1x6xf32>
    %18 = vector.broadcast %17 : vector<1x6xf32> to vector<128x6xf32>
    %19 = arith.addf %16, %18 : vector<128x6xf32>
    %20 = math.tanh %19 : vector<128x6xf32>
    %21 = vector.extract_strided_slice %0 {offsets = [0, 0], sizes = [128, 6], strides = [1, 1]} : vector<128x8xf32> to vector<128x6xf32>
    %22 = arith.addf %20, %21 : vector<128x6xf32>
    %c0_17 = arith.constant 0 : index
    %c0_18 = arith.constant 0 : index
    %23 = vector.load %arg8[%c0_17, %c0_18] : memref<128x6xf32, #tpu.memory_space<vmem>>, vector<128x6xf32>
    tpu.vector_store %arg8[%c0_17, %c0_18], %22 {strides = array<i32>} : memref<128x6xf32, #tpu.memory_space<vmem>>, vector<128x6xf32>,
    return
  }
  func.func @transform_0(%arg0: i32) -> (i32, i32) {
    %c0_i32 = arith.constant 0 : i32
    %c0_i32_0 = arith.constant 0 : i32
    return %arg0, %c0_i32 : i32, i32
  }
  func.func @transform_1(%arg0: i32) -> (i32, i32) {
    %c0_i32 = arith.constant 0 : i32
    %c0_i32_0 = arith.constant 0 : i32
    %c0_i32_1 = arith.constant 0 : i32
    return %c0_i32, %c0_i32_0 : i32, i32
  }
  func.func @transform_2(%arg0: i32) -> (i32, i32) {
    %c0_i32 = arith.constant 0 : i32
    %c0_i32_0 = arith.constant 0 : i32
    %c0_i32_1 = arith.constant 0 : i32
    return %c0_i32, %c0_i32_0 : i32, i32
  }
  func.func @transform_3(%arg0: i32) -> (i32, i32) {
    %c0_i32 = arith.constant 0 : i32
    %c0_i32_0 = arith.constant 0 : i32
    %c0_i32_1 = arith.constant 0 : i32
    return %c0_i32, %c0_i32_0 : i32, i32
  }
  func.func @transform_4(%arg0: i32) -> (i32, i32) {
    %c0_i32 = arith.constant 0 : i32
    %c0_i32_0 = arith.constant 0 : i32
    %c0_i32_1 = arith.constant 0 : i32
    return %c0_i32, %c0_i32_0 : i32, i32
  }
  func.func @transform_5(%arg0: i32) -> (i32, i32) {
    %c0_i32 = arith.constant 0 : i32
    %c0_i32_0 = arith.constant 0 : i32
    %c0_i32_1 = arith.constant 0 : i32
    return %c0_i32, %c0_i32_0 : i32, i32
  }
  func.func @transform_6(%arg0: i32) -> (i32, i32) {
    %c0_i32 = arith.constant 0 : i32
    %c0_i32_0 = arith.constant 0 : i32
    %c0_i32_1 = arith.constant 0 : i32
    return %c0_i32, %c0_i32_0 : i32, i32
  }
  func.func @transform_7(%arg0: i32) -> (i32, i32) {
    %c0_i32 = arith.constant 0 : i32
    %c0_i32_0 = arith.constant 0 : i32
    return %arg0, %c0_i32 : i32, i32
  }
}

</mosaic_0001>

<bundles_post_ra>
// kernel: neural_network_model.1
= control target key start
LH: loop header
LB: loop body
LE: loop exit
PB: predicated region body
PF: predicated region fallthrough
CT: control target
= control target key end

     0   :  { %vm50_vm0 = vcmask 64512   ;;  %vm271_vm1 = vcmask 261120   ;;  %vm717_vm2 = vcmask 48128   ;;  %s1304_s1 = inlined_call_operand.vmem [shape: f32[8,32], index: 1, kind: input, shape index: {}]   ;;  %s1305_s0 = inlined_call_operand.vmem [shape: f32[128,8], index: 0, kind: input, shape index: {}]   ;;  %s1306_s3 = inlined_call_operand.vmem [shape: f32[32,32], index: 3, kind: input, shape index: {}]   ;;  %s1307_s5 = inlined_call_operand.vmem [shape: f32[32,6], index: 5, kind: input, shape index: {}]   ;;  %s1308_s2 = inlined_call_operand.vmem [shape: f32[1,32], index: 2, kind: input, shape index: {}]   ;;  %s1309_s4 = inlined_call_operand.vmem [shape: f32[1,32], index: 4, kind: input, shape index: {}]   ;;  %s1310_s6 = inlined_call_operand.vmem [shape: f32[1,6], index: 6, kind: input, shape index: {}]   ;;  %s1311_s7 = inlined_call_operand.vmem [shape: f32[128,6], index: 7, kind: output, shape index: {}]  }
   0x1   :  { %v42_v0 = vld [vmem:[%s1304_s1] sm:$0xff]  ;;  %v1037_v2 = vld [vmem:[%s1305_s0 + $0x8] sm:$0xff]  ;;  %v1044_v3 = vld [vmem:[%s1305_s0 + $0x10] sm:$0xff] }
   0x2   :  { %v1032_v1 = vld [vmem:[%s1305_s0] sm:$0xff]  ;;  %846 = vmatprep.subr.mxu0 %v42_v0  ;;  %952 = vmatprep.subr.mxu1 %v42_v0  ;;  %v1056_v5 = vld [vmem:[%s1305_s0 + $0x48] sm:$0xff]  ;;  %v1061_v6 = vld [vmem:[%s1305_s0 + $0x50] sm:$0xff] }
   0x3   :  { %848 = vmatprep.mubr.msk.f32.mxu0 %vm50_vm0, %v1032_v1  ;;  %847 = vmatpush3.msra.mxu0 %v42_v0  ;;  %v1051_v4 = vld [vmem:[%s1305_s0 + $0x40] sm:$0xff]  ;;  %v1068_v7 = vld [vmem:[%s1305_s0 + $0x18] sm:$0xff]  ;;  %v261_v11 = vld [vmem:[%s1306_s3 + $0x8] sm:$0xff] }
   0x4   :  { %849 = vmatmul.mubr.msk.f32.vlgmr.msra.gmra.mrb[0].mxu0 %vm50_vm0, %v1037_v2  ;;  %953 = vmatpush3.msra.mxu1 %v42_v0  ;;  %v1075_v8 = vld [vmem:[%s1305_s0 + $0x20] sm:$0xff]  ;;  %v1082_v9 = vld [vmem:[%s1305_s0 + $0x58] sm:$0xff]  ;;  %v262_v12 = vld [vmem:[%s1306_s3 + $0x10] sm:$0xff] }
   0x5   :  { %851 = vmatprep.mubr.msk.f32.mxu0 %vm50_vm0, %v1044_v3  ;;  %860 = vmatprep.mubr.msk.f32.mxu1 %vm50_vm0, %v1051_v4  ;;  %v260_v10 = vld [vmem:[%s1306_s3] sm:$0xff]  ;;  %v263_v13 = vld [vmem:[%s1306_s3 + $0x18] sm:$0xff]  ;;  %v1110_v17 = vld [vmem:[%s1305_s0 + $0x28] sm:$0xff] }
   0x6   :  { %861 = vmatmul.mubr.msk.f32.vlgmr.msra.gmra.mrb[0].mxu1 %vm50_vm0, %v1056_v5  ;;  %v1103_v14 = vld [vmem:[%s1305_s0 + $0x60] sm:$0xff]  ;;  %v936_v15 = vpack.c.bf16 %v261_v11, %v260_v10  ;;  %v940_v16 = vpack.c.bf16 %v263_v13, %v262_v12  ;;  %v1115_v18 = vld [vmem:[%s1305_s0 + $0x30] sm:$0xff]  ;;  %v1124_v19 = vld [vmem:[%s1305_s0 + $0x68] sm:$0xff] }
   0x7   :  { %863 = vmatprep.mubr.msk.f32.mxu1 %vm50_vm0, %v1061_v6  ;;  %v1131_v20 = vld [vmem:[%s1305_s0 + $0x70] sm:$0xff]  ;;  %v1138_v21 = vld [vmem:[%s1305_s0 + $0x38] sm:$0xff]  ;;  %v481_v23 = vld [vmem:[%s1307_s5] sm:$0xff] }
   0x8   :  { %852 = vmatmul.mubr.msk.f32.gmra.mrb[2].mxu0 %vm50_vm0, %v1068_v7  ;;  %937 = vmatprep.subr.bf16.mxu1 %v936_v15  ;;  %v1147_v22 = vld [vmem:[%s1305_s0 + $0x78] sm:$0xff]  ;;  %v482_v24 = vld [vmem:[%s1307_s5 + $0x8] sm:$0xff]  ;;  %v483_v25 = vld [vmem:[%s1307_s5 + $0x10] sm:$0xff] }
   0x9   :  { %854 = vmatprep.mubr.msk.f32.mxu0 %vm50_vm0, %v1075_v8  ;;  %939 = vmatpush3.bf16.msra.mxu1 %v936_v15  ;;  %v944_v26 = vpack.c.bf16 %v482_v24, %v481_v23  ;;  %v484_v27 = vld [vmem:[%s1307_s5 + $0x18] sm:$0xff]  ;;  %v738_v29 = vld [vmem:[%s1308_s2] ss:$0 sm:$0xff] }
   0xa   :  { %864 = vmatmul.mubr.msk.f32.gmra.mrb[2].mxu1 %vm50_vm0, %v1082_v9  ;;  %941 = vmatprep.subr.bf16.mxu1 %v940_v16  ;;  %v948_v28 = vpack.c.bf16 %v484_v27, %v483_v25 }
   0xb   :  { %866 = vmatprep.mubr.msk.f32.mxu1 %vm50_vm0, %v1103_v14  ;;  %945 = vmatprep.subr.bf16.mxu0 %v944_v26 }
   0xc   :  { %855 = vmatmul.mubr.msk.f32.gmra.mrb[4].mxu0 %vm50_vm0, %v1110_v17 }
   0xd   :  { %857 = vmatprep.mubr.msk.f32.mxu0 %vm50_vm0, %v1115_v18  ;;  %943 = vmatpush3.bf16.msra.mxu1 %v940_v16 }
   0xe   :  { %867 = vmatmul.mubr.msk.f32.gmra.mrb[4].mxu1 %vm50_vm0, %v1124_v19  ;;  %947 = vmatpush3.bf16.msra.mxu0 %v944_v26 }
   0xf   :  { %869 = vmatprep.mubr.msk.f32.mxu1 %vm50_vm0, %v1131_v20  ;;  %949 = vmatprep.subr.bf16.mxu0 %v948_v28 }
  0x10   :  { %858 = vmatmul.mubr.msk.f32.gmra.mrb[6].mxu0 %vm50_vm0, %v1138_v21 }
  0x12   :  { %870 = vmatmul.mubr.msk.f32.gmra.mrb[6].mxu1 %vm50_vm0, %v1147_v22  ;;  %951 = vmatpush3.bf16.msra.mxu0 %v948_v28 }
  0xd7   :  { %v850_v30 = vpop.f32.mrb[0].mxu0 }
  0xd8   :  { %v171_v31 = vadd.f32 %v850_v30, %v738_v29  ;;  %v165_v32 = vpop.f32.mrb[1].mxu0 }
  0xd9   :  { %v166_v33 = vadd.f32 %v738_v29, %v165_v32  ;;  %v862_v34 = vpop.f32.mrb[0].mxu1 }
  0xda   :  { %v205_v35 = vpop.f32.mrb[1].mxu1  ;;  %v245_v38 = vmax.f32 %v171_v31, 0.0  ;;  %v211_v10 = vadd.f32 %v862_v34, %v738_v29  ;;  %v755_v31 = vld [vmem:[%s1309_s4] ss:$0 sm:$0xff] }
  0xdb   :  { %v244_v36 = vmax.f32 %v166_v33, 0.0  ;;  %v853_v37 = vpop.f32.mrb[2].mxu0  ;;  %v206_v54 = vadd.f32 %v738_v29, %v205_v35 }
  0xdc   :  { %v181_v39 = vadd.f32 %v853_v37, %v738_v29  ;;  %v175_v40 = vpop.f32.mrb[3].mxu0  ;;  %v253_v13 = vmax.f32 %v211_v10, 0.0 }
  0xdd   :  { %v176_v41 = vadd.f32 %v738_v29, %v175_v40  ;;  %880 = vmatprep.mubr.msk.f32.mxu1 %vm271_vm1, %v244_v36  ;;  %v865_v42 = vpop.f32.mrb[2].mxu1  ;;  %v252_v62 = vmax.f32 %v206_v54, 0.0 }
  0xde   :  { %881 = vmatmul.mubr.msk.f32.vlgmr.msra.gmra.mrb[8].mxu1 %vm271_vm1, %v245_v38  ;;  %v215_v43 = vpop.f32.mrb[3].mxu1  ;;  %v247_v46 = vmax.f32 %v181_v39, 0.0  ;;  %v221_v15 = vadd.f32 %v865_v42, %v738_v29 }
  0xdf   :  { %v246_v44 = vmax.f32 %v176_v41, 0.0  ;;  %v856_v45 = vpop.f32.mrb[4].mxu0  ;;  %v216_v63 = vadd.f32 %v738_v29, %v215_v43 }
  0xe0   :  { %v191_v47 = vadd.f32 %v856_v45, %v738_v29  ;;  %v185_v48 = vpop.f32.mrb[5].mxu0  ;;  %v255_v24 = vmax.f32 %v221_v15, 0.0 }
  0xe1   :  { %v186_v49 = vadd.f32 %v738_v29, %v185_v48  ;;  %883 = vmatprep.mubr.msk.f32.mxu1 %vm271_vm1, %v246_v44  ;;  %v868_v50 = vpop.f32.mrb[4].mxu1  ;;  %v254_v11 = vmax.f32 %v216_v63, 0.0 }
  0xe2   :  { %884 = vmatmul.mubr.msk.f32.gmra.mrb[10].mxu1 %vm271_vm1, %v247_v46  ;;  %v225_v51 = vpop.f32.mrb[5].mxu1  ;;  %v249_v55 = vmax.f32 %v191_v47, 0.0  ;;  %v231_v25 = vadd.f32 %v868_v50, %v738_v29 }
  0xe3   :  { %v248_v52 = vmax.f32 %v186_v49, 0.0  ;;  %v859_v53 = vpop.f32.mrb[6].mxu0  ;;  %v226_v12 = vadd.f32 %v738_v29, %v225_v51 }
  0xe4   :  { %v201_v56 = vadd.f32 %v859_v53, %v738_v29  ;;  %v195_v57 = vpop.f32.mrb[7].mxu0  ;;  %v257_v27 = vmax.f32 %v231_v25, 0.0 }
  0xe5   :  { %v196_v58 = vadd.f32 %v738_v29, %v195_v57  ;;  %886 = vmatprep.mubr.msk.f32.mxu1 %vm271_vm1, %v248_v52  ;;  %v871_v59 = vpop.f32.mrb[6].mxu1  ;;  %v256_v16 = vmax.f32 %v226_v12, 0.0 }
  0xe6   :  { %887 = vmatmul.mubr.msk.f32.gmra.mrb[12].mxu1 %vm271_vm1, %v249_v55  ;;  %v235_v60 = vpop.f32.mrb[7].mxu1  ;;  %v251_v0 = vmax.f32 %v201_v56, 0.0  ;;  %v241_v28 = vadd.f32 %v871_v59, %v738_v29 }
  0xe7   :  { %v250_v61 = vmax.f32 %v196_v58, 0.0  ;;  %v236_v23 = vadd.f32 %v738_v29, %v235_v60 }
  0xe8   :  { %v259_v30 = vmax.f32 %v241_v28, 0.0 }
  0xe9   :  { %889 = vmatprep.mubr.msk.f32.mxu1 %vm271_vm1, %v250_v61  ;;  %v258_v26 = vmax.f32 %v236_v23, 0.0 }
  0xea   :  { %890 = vmatmul.mubr.msk.f32.gmra.mrb[14].mxu1 %vm271_vm1, %v251_v0 }
  0xeb   :  { %892 = vmatprep.mubr.msk.f32.mxu1 %vm271_vm1, %v252_v62 }
  0xee   :  { %893 = vmatmul.mubr.msk.f32.gmra.mrb[16].mxu1 %vm271_vm1, %v253_v13 }
  0xef   :  { %895 = vmatprep.mubr.msk.f32.mxu1 %vm271_vm1, %v254_v11 }
  0xf2   :  { %896 = vmatmul.mubr.msk.f32.gmra.mrb[18].mxu1 %vm271_vm1, %v255_v24 }
  0xf3   :  { %898 = vmatprep.mubr.msk.f32.mxu1 %vm271_vm1, %v256_v16 }
  0xf6   :  { %899 = vmatmul.mubr.msk.f32.gmra.mrb[20].mxu1 %vm271_vm1, %v257_v27 }
  0xf7   :  { %901 = vmatprep.mubr.msk.f32.mxu1 %vm271_vm1, %v258_v26 }
  0xfa   :  { %902 = vmatmul.mubr.msk.f32.gmra.mrb[22].mxu1 %vm271_vm1, %v259_v30 }
 0x1b1   :  { %v882_v32 = vpop.f32.mrb[8].mxu1 }
 0x1b2   :  { %v392_v33 = vadd.f32 %v882_v32, %v755_v31  ;;  %v386_v34 = vpop.f32.mrb[9].mxu1 }
 0x1b3   :  { %v387_v35 = vadd.f32 %v755_v31, %v386_v34 }
 0x1b4   :  { %v466_v38 = vmax.f32 %v392_v33, 0.0  ;;  %v1206_v33 = vld [vmem:[%s1310_s6] ss:$0 sm:$0xff] }
 0x1b5   :  { %v465_v36 = vmax.f32 %v387_v35, 0.0  ;;  %v885_v37 = vpop.f32.mrb[10].mxu1 }
 0x1b6   :  { %v402_v39 = vadd.f32 %v885_v37, %v755_v31  ;;  %v396_v29 = vpop.f32.mrb[11].mxu1 }
 0x1b7   :  { %v397_v40 = vadd.f32 %v755_v31, %v396_v29  ;;  %912 = vmatprep.mubr.msk.f32.mxu0 %vm271_vm1, %v465_v36 }
 0x1b8   :  { %913 = vmatmul.mubr.msk.f32.vlgmr.msra.gmra.mrb[8].mxu0 %vm271_vm1, %v466_v38  ;;  %v468_v43 = vmax.f32 %v402_v39, 0.0 }
 0x1b9   :  { %v467_v41 = vmax.f32 %v397_v40, 0.0  ;;  %v888_v42 = vpop.f32.mrb[12].mxu1 }
 0x1ba   :  { %v412_v44 = vadd.f32 %v888_v42, %v755_v31  ;;  %v406_v45 = vpop.f32.mrb[13].mxu1 }
 0x1bb   :  { %v407_v46 = vadd.f32 %v755_v31, %v406_v45  ;;  %915 = vmatprep.mubr.msk.f32.mxu0 %vm271_vm1, %v467_v41 }
 0x1bc   :  { %916 = vmatmul.mubr.msk.f32.gmra.mrb[10].mxu0 %vm271_vm1, %v468_v43  ;;  %v470_v49 = vmax.f32 %v412_v44, 0.0 }
 0x1bd   :  { %v469_v47 = vmax.f32 %v407_v46, 0.0  ;;  %v891_v48 = vpop.f32.mrb[14].mxu1 }
 0x1be   :  { %v422_v50 = vadd.f32 %v891_v48, %v755_v31  ;;  %v416_v51 = vpop.f32.mrb[15].mxu1 }
 0x1bf   :  { %v417_v52 = vadd.f32 %v755_v31, %v416_v51  ;;  %918 = vmatprep.mubr.msk.f32.mxu0 %vm271_vm1, %v469_v47 }
 0x1c0   :  { %919 = vmatmul.mubr.msk.f32.gmra.mrb[12].mxu0 %vm271_vm1, %v470_v49  ;;  %v472_v55 = vmax.f32 %v422_v50, 0.0 }
 0x1c1   :  { %v471_v53 = vmax.f32 %v417_v52, 0.0  ;;  %v894_v54 = vpop.f32.mrb[16].mxu1 }
 0x1c2   :  { %v432_v56 = vadd.f32 %v894_v54, %v755_v31  ;;  %v426_v57 = vpop.f32.mrb[17].mxu1 }
 0x1c3   :  { %v427_v58 = vadd.f32 %v755_v31, %v426_v57  ;;  %921 = vmatprep.mubr.msk.f32.mxu0 %vm271_vm1, %v471_v53 }
 0x1c4   :  { %922 = vmatmul.mubr.msk.f32.gmra.mrb[14].mxu0 %vm271_vm1, %v472_v55  ;;  %v474_v61 = vmax.f32 %v432_v56, 0.0 }
 0x1c5   :  { %v473_v59 = vmax.f32 %v427_v58, 0.0  ;;  %v897_v60 = vpop.f32.mrb[18].mxu1 }
 0x1c6   :  { %v442_v62 = vadd.f32 %v897_v60, %v755_v31  ;;  %v436_v63 = vpop.f32.mrb[19].mxu1 }
 0x1c7   :  { %v437_v0 = vadd.f32 %v755_v31, %v436_v63  ;;  %924 = vmatprep.mubr.msk.f32.mxu0 %vm271_vm1, %v473_v59 }
 0x1c8   :  { %925 = vmatmul.mubr.msk.f32.gmra.mrb[16].mxu0 %vm271_vm1, %v474_v61  ;;  %v476_v12 = vmax.f32 %v442_v62, 0.0 }
 0x1c9   :  { %v475_v10 = vmax.f32 %v437_v0, 0.0  ;;  %v900_v11 = vpop.f32.mrb[20].mxu1 }
 0x1ca   :  { %v452_v13 = vadd.f32 %v900_v11, %v755_v31  ;;  %v446_v15 = vpop.f32.mrb[21].mxu1 }
 0x1cb   :  { %v447_v16 = vadd.f32 %v755_v31, %v446_v15  ;;  %927 = vmatprep.mubr.msk.f32.mxu0 %vm271_vm1, %v475_v10 }
 0x1cc   :  { %928 = vmatmul.mubr.msk.f32.gmra.mrb[18].mxu0 %vm271_vm1, %v476_v12  ;;  %v478_v25 = vmax.f32 %v452_v13, 0.0 }
 0x1cd   :  { %v477_v23 = vmax.f32 %v447_v16, 0.0  ;;  %v903_v24 = vpop.f32.mrb[22].mxu1 }
 0x1ce   :  { %v462_v26 = vadd.f32 %v903_v24, %v755_v31  ;;  %v456_v27 = vpop.f32.mrb[23].mxu1 }
 0x1cf   :  { %v457_v28 = vadd.f32 %v755_v31, %v456_v27  ;;  %930 = vmatprep.mubr.msk.f32.mxu0 %vm271_vm1, %v477_v23 }
 0x1d0   :  { %931 = vmatmul.mubr.msk.f32.gmra.mrb[20].mxu0 %vm271_vm1, %v478_v25  ;;  %v480_v32 = vmax.f32 %v462_v26, 0.0 }
 0x1d1   :  { %v479_v30 = vmax.f32 %v457_v28, 0.0 }
 0x1d3   :  { %933 = vmatprep.mubr.msk.f32.mxu0 %vm271_vm1, %v479_v30 }
 0x1d4   :  { %934 = vmatmul.mubr.msk.f32.gmra.mrb[22].mxu0 %vm271_vm1, %v480_v32 }
 0x28b   :  { %v914_v34 = vpop.f32.mrb[8].mxu0 }
 0x28c   :  { %v612_v35 = vadd.f32 %v914_v34, %v1206_v33  ;;  %v606_v36 = vpop.f32.mrb[9].mxu0 }
 0x28d   :  { %v607_v31 = vadd.f32 %v1206_v33, %v606_v36 }
 0x28e   :  { %954 = vtanh.f32 %v612_v35 }
 0x28f   :  { %956 = vtanh.f32 %v607_v31  ;;  %v917_v37 = vpop.f32.mrb[10].mxu0 }
 0x290   :  { %v622_v38 = vadd.f32 %v917_v37, %v1206_v33  ;;  %v616_v39 = vpop.f32.mrb[11].mxu0 }
 0x291   :  { %v617_v29 = vadd.f32 %v1206_v33, %v616_v39 }
 0x292   :  { %958 = vtanh.f32 %v622_v38 }
 0x293   :  { %960 = vtanh.f32 %v617_v29  ;;  %v920_v40 = vpop.f32.mrb[12].mxu0 }
 0x294   :  { %v632_v41 = vadd.f32 %v920_v40, %v1206_v33  ;;  %v626_v42 = vpop.f32.mrb[13].mxu0 }
 0x295   :  { %v627_v43 = vadd.f32 %v1206_v33, %v626_v42 }
 0x296   :  { %962 = vtanh.f32 %v632_v41 }
 0x297   :  { %964 = vtanh.f32 %v627_v43  ;;  %v923_v44 = vpop.f32.mrb[14].mxu0 }
 0x298   :  { %v955_v45 = vpop.eup %954  ;;  %v642_v46 = vadd.f32 %v923_v44, %v1206_v33  ;;  %v636_v47 = vpop.f32.mrb[15].mxu0 }
 0x299   :  { %v957_v48 = vpop.eup %956  ;;  %v702_v49 = vadd.f32 %v955_v45, %v1037_v2  ;;  %v637_v50 = vadd.f32 %v1206_v33, %v636_v47 }
 0x29a   :  { %v701_v51 = vadd.f32 %v957_v48, %v1032_v1  ;;  %966 = vtanh.f32 %v642_v46 }
 0x29b   :  { %719 = vst.msk [vmem:[%s1311_s7 + $0x8] sm:$0xff] %vm717_vm2, %v702_v49  ;;  %968 = vtanh.f32 %v637_v50  ;;  %v926_v52 = vpop.f32.mrb[16].mxu0 }
 0x29c   :  { %v959_v53 = vpop.eup %958  ;;  %718 = vst.msk [vmem:[%s1311_s7] sm:$0xff] %vm717_vm2, %v701_v51  ;;  %v652_v2 = vadd.f32 %v926_v52, %v1206_v33  ;;  %v646_v54 = vpop.f32.mrb[17].mxu0 }
 0x29d   :  { %v961_v55 = vpop.eup %960  ;;  %v704_v1 = vadd.f32 %v959_v53, %v1068_v7  ;;  %v647_v56 = vadd.f32 %v1206_v33, %v646_v54 }
 0x29e   :  { %v703_v57 = vadd.f32 %v961_v55, %v1044_v3  ;;  %970 = vtanh.f32 %v652_v2 }
 0x29f   :  { %721 = vst.msk [vmem:[%s1311_s7 + $0x18] sm:$0xff] %vm717_vm2, %v704_v1  ;;  %972 = vtanh.f32 %v647_v56  ;;  %v929_v58 = vpop.f32.mrb[18].mxu0 }
 0x2a0   :  { %v963_v59 = vpop.eup %962  ;;  %720 = vst.msk [vmem:[%s1311_s7 + $0x10] sm:$0xff] %vm717_vm2, %v703_v57  ;;  %v662_v7 = vadd.f32 %v929_v58, %v1206_v33  ;;  %v656_v60 = vpop.f32.mrb[19].mxu0 }
 0x2a1   :  { %v965_v61 = vpop.eup %964  ;;  %v706_v3 = vadd.f32 %v963_v59, %v1110_v17  ;;  %v657_v62 = vadd.f32 %v1206_v33, %v656_v60 }
 0x2a2   :  { %v705_v63 = vadd.f32 %v965_v61, %v1075_v8  ;;  %974 = vtanh.f32 %v662_v7 }
 0x2a3   :  { %723 = vst.msk [vmem:[%s1311_s7 + $0x28] sm:$0xff] %vm717_vm2, %v706_v3  ;;  %976 = vtanh.f32 %v657_v62  ;;  %v932_v0 = vpop.f32.mrb[20].mxu0 }
 0x2a4   :  { %v967_v10 = vpop.eup %966  ;;  %722 = vst.msk [vmem:[%s1311_s7 + $0x20] sm:$0xff] %vm717_vm2, %v705_v63  ;;  %v672_v17 = vadd.f32 %v932_v0, %v1206_v33  ;;  %v666_v11 = vpop.f32.mrb[21].mxu0 }
 0x2a5   :  { %v969_v12 = vpop.eup %968  ;;  %v708_v8 = vadd.f32 %v967_v10, %v1138_v21  ;;  %v667_v13 = vadd.f32 %v1206_v33, %v666_v11 }
 0x2a6   :  { %v707_v15 = vadd.f32 %v969_v12, %v1115_v18  ;;  %978 = vtanh.f32 %v672_v17 }
 0x2a7   :  { %725 = vst.msk [vmem:[%s1311_s7 + $0x38] sm:$0xff] %vm717_vm2, %v708_v8  ;;  %980 = vtanh.f32 %v667_v13  ;;  %v935_v16 = vpop.f32.mrb[22].mxu0 }
 0x2a8   :  { %v971_v23 = vpop.eup %970  ;;  %724 = vst.msk [vmem:[%s1311_s7 + $0x30] sm:$0xff] %vm717_vm2, %v707_v15  ;;  %v682_v21 = vadd.f32 %v935_v16, %v1206_v33  ;;  %v676_v24 = vpop.f32.mrb[23].mxu0 }
 0x2a9   :  { %v973_v25 = vpop.eup %972  ;;  %v710_v18 = vadd.f32 %v971_v23, %v1056_v5  ;;  %v677_v26 = vadd.f32 %v1206_v33, %v676_v24 }
 0x2aa   :  { %v709_v27 = vadd.f32 %v973_v25, %v1051_v4  ;;  %982 = vtanh.f32 %v682_v21 }
 0x2ab   :  { %727 = vst.msk [vmem:[%s1311_s7 + $0x48] sm:$0xff] %vm717_vm2, %v710_v18  ;;  %984 = vtanh.f32 %v677_v26 }
 0x2ac   :  { %v975_v28 = vpop.eup %974  ;;  %726 = vst.msk [vmem:[%s1311_s7 + $0x40] sm:$0xff] %vm717_vm2, %v709_v27 }
 0x2ad   :  { %v977_v30 = vpop.eup %976  ;;  %v712_v5 = vadd.f32 %v975_v28, %v1082_v9 }
 0x2ae   :  { %v711_v32 = vadd.f32 %v977_v30, %v1061_v6 }
 0x2af   :  { %729 = vst.msk [vmem:[%s1311_s7 + $0x58] sm:$0xff] %vm717_vm2, %v712_v5 }
 0x2b0   :  { %v979_v4 = vpop.eup %978  ;;  %728 = vst.msk [vmem:[%s1311_s7 + $0x50] sm:$0xff] %vm717_vm2, %v711_v32 }
 0x2b1   :  { %v981_v33 = vpop.eup %980  ;;  %v714_v34 = vadd.f32 %v979_v4, %v1124_v19 }
 0x2b2   :  { %v713_v35 = vadd.f32 %v981_v33, %v1103_v14 }
 0x2b3   :  { %731 = vst.msk [vmem:[%s1311_s7 + $0x68] sm:$0xff] %vm717_vm2, %v714_v34 }
 0x2b4   :  { %v983_v6 = vpop.eup %982  ;;  %730 = vst.msk [vmem:[%s1311_s7 + $0x60] sm:$0xff] %vm717_vm2, %v713_v35 }
 0x2b5   :  { %v985_v9 = vpop.eup %984  ;;  %v716_v36 = vadd.f32 %v983_v6, %v1147_v22 }
 0x2b6   :  { %v715_v31 = vadd.f32 %v985_v9, %v1131_v20 }
 0x2b7   :  { %733 = vst.msk [vmem:[%s1311_s7 + $0x78] sm:$0xff] %vm717_vm2, %v716_v36 }
 0x2b8   :  { %732 = vst.msk [vmem:[%s1311_s7 + $0x70] sm:$0xff] %vm717_vm2, %v715_v31 }

</bundles_post_ra>
